<compile_context>
chip_gen: v6e
topology: v6e:2x2x1
jax: 0.10.0
libtpu: 0.0.40
codegen_flags: <defaults>
</compile_context>

<pallas_src>
import functools
import math

import jax
import jax.numpy as jnp
from jax import lax
from jax.experimental import pallas as pl
from jax.experimental.pallas import tpu as pltpu


def _round_up(x, m):
    return (x + m - 1) // m * m


_VMEM_BLOCK_BUDGET = 40 * 1024 * 1024   # double-buffered blocks target (v7x-safe)
_VMEM_LIMIT_CAP = 56 * 1024 * 1024      # never ask for more than this scoped VMEM


def _downsample_conv_kernel(xs_ref, w1_ref, w2_ref, b_ref, o_ref):
    # xs_ref: (1, tho, W2p, 6C)  tap-stacked input rows for this output-row band
    # w1_ref: (6C, tco)          weights of the 6 column-unshifted taps (kh x kw in {0,1})
    # w2_ref: (3C, tco)          weights of the 3 kw==2 taps
    # b_ref : (1, tco)           bias (f32, Cout zero-padded to lane-dense tco)
    # o_ref : (1, tho*W2p, tco)
    _, tho, w2p, c6 = xs_ref.shape
    c3 = w2_ref.shape[0]
    rows = tho * w2p

    # Layout-trivial flatten: W2p is a multiple of the sublane packing of the compute
    # dtype (8 for f32, 16 for bf16), so Mosaic does not insert a relayout copy here.
    fx = xs_ref[0].reshape(rows, c6)

    # 6 taps fused into one K=6C MXU matmul, f32 accumulation.
    y = jnp.dot(fx, w1_ref[...], preferred_element_type=jnp.float32)

    # 3 kw==2 taps: K=3C matmul on the kw==0 channel stack, then shift the f32 partial
    # result up by one flattened row (= one output column).  Wrapped / cross-band-row
    # values only land in output columns >= Wout which the wrapper slices off (the
    # wrapper asserts Wout < W2p so the halo column absorbs them).
    # TODO(synk): pltpu.roll would keep this shift on the XLU slot; jnp.roll
    # (slice+concat) is used here for guaranteed rotation semantics.
    y2 = jnp.dot(fx[:, :c3], w2_ref[...], preferred_element_type=jnp.float32)
    y = y + jnp.roll(y2, shift=-1, axis=0)

    y = y + b_ref[...]
    o_ref[0] = y.astype(o_ref.dtype)


@functools.partial(jax.jit,
                   static_argnames=("padding", "compute_dtype", "tho", "tco"))
def downsample_conv(x_nchw, weight_oihw, bias, padding=1, compute_dtype=None,
                    tho=None, tco=None):
    """Conv2d(C, Cout, 3, stride=2, padding=padding) on NCHW input (Downsample.op)."""
    N, C, H, W = x_nchw.shape
    Cout = weight_oihw.shape[0]
    out_dtype = jnp.dtype(x_nchw.dtype)
    cdt = jnp.dtype(compute_dtype) if compute_dtype is not None else out_dtype
    isz = cdt.itemsize
    osz = out_dtype.itemsize

    Hout = (H + 2 * padding - 3) // 2 + 1
    Wout = (W + 2 * padding - 3) // 2 + 1

    # Sublane packing of the compute dtype (f32:8, bf16:16, fp8:32) -> free in-kernel
    # (tho, W2p, 6C) -> (rows, 6C) flatten.
    sub = 8 * max(1, 4 // isz)
    W2 = Wout + 1                       # +1 halo column for the kw==2 taps
    W2p = _round_up(W2, sub)
    # Roll-trick invariant: shifted garbage must land only in columns >= Wout.
    assert Wout < W2p, (Wout, W2p)
    Coutp = _round_up(Cout, 128)        # lane-dense (unmasked vst) output stores

    # ---- cout tile: 256 on 256-wide MXUs, 128 on v5e / small Coutp ----
    if tco is None:
        tco = 256 if Coutp % 256 == 0 else 128
        try:
            if "v5" in jax.devices()[0].device_kind.lower():
                tco = 128          # one 128x128 MXU weight pass, half the weight DMA
        except Exception:
            pass
    tco = max(128, min(_round_up(tco, 128), Coutp))
    tco = math.gcd(tco, Coutp)

    # ---- row-band tile: rows = tho*W2p ~ 1024, <=12.5% padded rows, fits VMEM ----
    def est_vmem(t_h, t_c):
        rows = t_h * W2p
        xs_b = rows * 6 * C * isz
        w_b = 9 * C * t_c * isz
        o_b = rows * t_c * osz
        tmp = 3 * rows * t_c * 4 + xs_b       # y / y2 f32 temporaries + slack
        return 2 * (xs_b + w_b + o_b + t_c * 4) + tmp

    if tho is None:
        t_max = max(1, min(Hout, 1024 // W2p))
        tho = 1
        for t in range(1, t_max + 1):
            if ((-Hout) % t) * 8 <= Hout:     # at most ~12.5% padded output rows
                tho = t
    tho = max(1, min(tho, Hout))
    while est_vmem(tho, tco) > _VMEM_BLOCK_BUDGET and (tho > 1 or tco > 128):
        if tho > 1:
            tho = (tho + 1) // 2
        else:
            tco = math.gcd(max(128, tco // 2), Coutp)
    vmem_limit = int(min(_VMEM_LIMIT_CAP, est_vmem(tho, tco) + (16 << 20)))

    Houtp = _round_up(Hout, tho)
    T = Houtp // tho
    Cc = Coutp // tco

    # ---- glue (single fused XLA chain): NCHW->NHWC, zero-pad, 6-way tap stack ----
    xt = jnp.transpose(x_nchw, (0, 2, 3, 1)).astype(cdt)          # NHWC
    Hp2, Wp2 = 2 * (Houtp + 1), 2 * W2p
    xpad = jnp.pad(xt, ((0, 0),
                        (padding, Hp2 - H - padding),
                        (padding, Wp2 - W - padding),
                        (0, 0)))
    xr = xpad.reshape(N, Houtp + 1, 2, W2p, 2, C)                 # [n,a,p,j,q,c] = xpad[n,2a+p,2j+q,c]
    # channel stack order: (kh, kw) = (0,0),(1,0),(2,0),(0,1),(1,1),(2,1)
    taps = ((0, 0), (1, 0), (2, 0), (0, 1), (1, 1), (2, 1))
    xs = jnp.concatenate(
        [xr[:, (kh // 2):(kh // 2) + Houtp, kh % 2, :, kw, :] for kh, kw in taps],
        axis=-1)                                                  # (N, Houtp, W2p, 6C)

    w = weight_oihw.astype(cdt)                                   # (Cout, C, 3, 3)

    def wmat(kh, kw):                                             # (C, Cout)
        return jnp.transpose(w[:, :, kh, kw], (1, 0))

    w1 = jnp.pad(jnp.concatenate([wmat(kh, kw) for kh, kw in taps], axis=0),
                 ((0, 0), (0, Coutp - Cout)))                     # (6C, Coutp)
    w2 = jnp.pad(jnp.concatenate([wmat(kh, 2) for kh in range(3)], axis=0),
                 ((0, 0), (0, Coutp - Cout)))                     # (3C, Coutp)
    b = jnp.pad(bias.astype(jnp.float32), (0, Coutp - Cout)).reshape(1, Coutp)

    # ---- data-size-driven grid order (weight vs activation residency) ----
    xs_total = N * T * tho * W2p * 6 * C * isz       # total xs bytes (one pass)
    w_total = 9 * C * Coutp * isz                    # total weight bytes
    weights_resident = (Cc - 1) * xs_total < (N * T - 1) * w_total

    if weights_resident:
        # cout outermost: w1/w2/b block index constant across consecutive (n,t) steps
        # -> Pallas skips their re-DMA; xs re-fetched per cout tile.
        grid = (Cc, N, T)
        xs_map = lambda c, n, t: (n, t, 0, 0)
        w_map = lambda c, n, t: (0, c)
        o_map = lambda c, n, t: (n, t, c)
    else:
        # cout innermost: xs band stays VMEM-resident across cout tiles.
        grid = (N, T, Cc)
        xs_map = lambda n, t, c: (n, t, 0, 0)
        w_map = lambda n, t, c: (0, c)
        o_map = lambda n, t, c: (n, t, c)

    out = pl.pallas_call(
        _downsample_conv_kernel,
        out_shape=jax.ShapeDtypeStruct((N, Houtp * W2p, Coutp), out_dtype),
        grid=grid,
        in_specs=[
            pl.BlockSpec((1, tho, W2p, 6 * C), xs_map),
            pl.BlockSpec((6 * C, tco), w_map),
            pl.BlockSpec((3 * C, tco), w_map),
            pl.BlockSpec((1, tco), w_map),
        ],
        out_specs=pl.BlockSpec((1, tho * W2p, tco), o_map),
        compiler_params=pltpu.CompilerParams(
            dimension_semantics=("parallel", "parallel", "parallel"),
            vmem_limit_bytes=vmem_limit),
    )(xs, w1, w2, b)

    out = out.reshape(N, Houtp, W2p, Coutp)[:, :Hout, :Wout, :Cout]
    return jnp.transpose(out, (0, 3, 1, 2)).astype(out_dtype)     # back to NCHW


class Downsample:
    """Minimal JAX/Pallas port of the PyTorch Downsample module (conv branch)."""

    def __init__(self, channels, use_conv, dims=2, out_channels=None, padding=1, *,
                 key, compute_dtype=jnp.bfloat16):
        assert use_conv and dims == 2, "only use_conv=True, dims=2 implemented"
        # TODO(synk): use_conv=False (avg-pool) branch and dims in {1, 3} not implemented.
        self.channels = channels
        self.out_channels = out_channels or channels
        self.padding = padding
        self.compute_dtype = compute_dtype     # bf16 compute + f32 accumulation default
        kw_, kb_ = jax.random.split(key)
        self.weight = 0.1 * jax.random.normal(
            kw_, (self.out_channels, channels, 3, 3), jnp.float32)
        self.bias = 0.1 * jax.random.normal(kb_, (self.out_channels,), jnp.float32)

    def __call__(self, x, **kwargs):
        assert x.shape[1] == self.channels
        return downsample_conv(x, self.weight, self.bias, padding=self.padding,
                               compute_dtype=self.compute_dtype, **kwargs)


if __name__ == "__main__":
    key = jax.random.PRNGKey(0)
    k_x, k_mod = jax.random.split(key)

    N, C, H, W = 2, 4, 16, 16
    Cout = 8
    x = jax.random.normal(k_x, (N, C, H, W), jnp.float32)

    mod = Downsample(channels=C, use_conv=True, dims=2, out_channels=Cout,
                     padding=1, key=k_mod)

    # Reference: XLA conv with the same semantics as torch Conv2d(3, stride=2, pad=1).
    ref = lax.conv_general_dilated(
        x, mod.weight, window_strides=(2, 2), padding=((1, 1), (1, 1)),
        dimension_numbers=("NCHW", "OIHW", "NCHW")) + mod.bias[None, :, None, None]

    # f32 compute path: exact conv semantics, tight tolerance (auto-picked tiles).
    out_f32 = jax.block_until_ready(
        downsample_conv(x, mod.weight, mod.bias, padding=1,
                        compute_dtype=jnp.float32))
    assert out_f32.shape == (N, Cout, H // 2, W // 2), out_f32.shape
    assert jnp.allclose(out_f32, ref, rtol=1e-4, atol=1e-4), \
        float(jnp.max(jnp.abs(out_f32 - ref)))

    # f32 path again with a forced small row band (tho=2 -> T=4) to exercise the
    # multi-band grid and the per-band roll trick.
    out_bands = jax.block_until_ready(
        downsample_conv(x, mod.weight, mod.bias, padding=1, tho=2, tco=128,
                        compute_dtype=jnp.float32))
    assert jnp.allclose(out_bands, ref, rtol=1e-4, atol=1e-4), \
        float(jnp.max(jnp.abs(out_bands - ref)))

    # bf16 compute path (module default; recommended on v5e/v6e/v7x): activations and
    # weights are quantized to bf16 before the MXU, accumulation stays f32 -> looser
    # tolerance vs the PyTorch-style f32 reference.
    out_bf16 = jax.block_until_ready(mod(x))
    assert out_bf16.shape == (N, Cout, H // 2, W // 2), out_bf16.shape
    assert jnp.allclose(out_bf16, ref, rtol=5e-2, atol=5e-2), \
        float(jnp.max(jnp.abs(out_bf16 - ref)))

    print("KERNEL_OK")
</pallas_src>

<mosaic_0001>
module attributes {stable_mosaic.version = 11 : i64} {
  func.func @_downsample_conv_kernel(%arg0: i32, %arg1: i32, %arg2: i32, %arg3: memref<1x8x16x24xf32, #tpu.memory_space<vmem>>, %arg4: memref<24x128xf32, #tpu.memory_space<vmem>>, %arg5: memref<12x128xf32, #tpu.memory_space<vmem>>, %arg6: memref<1x128xf32, #tpu.memory_space<vmem>>, %arg7: memref<1x128x128xf32, #tpu.memory_space<vmem>>) attributes {dimension_semantics = [#tpu.dimension_semantics<parallel>, #tpu.dimension_semantics<parallel>, #tpu.dimension_semantics<parallel>], iteration_bounds = array<i64: 1, 2, 1>, scalar_prefetch = 0 : i64, scratch_operands = 0 : i64, tpu.core_type = #tpu.core_type<tc>, window_params = [{transform_indices = @transform_0, window_bounds = array<i64: 1, 8, 16, 24>}, {transform_indices = @transform_1, window_bounds = array<i64: 24, 128>}, {transform_indices = @transform_2, window_bounds = array<i64: 12, 128>}, {transform_indices = @transform_3, window_bounds = array<i64: 1, 128>}, {transform_indices = @transform_4, window_bounds = array<i64: 1, 128, 128>}]} {
    %c0 = arith.constant 0 : index
    %c0_0 = arith.constant 0 : index
    %c0_1 = arith.constant 0 : index
    %c0_2 = arith.constant 0 : index
    %0 = vector.load %arg3[%c0, %c0_0, %c0_1, %c0_2] : memref<1x8x16x24xf32, #tpu.memory_space<vmem>>, vector<1x8x16x24xf32>
    %1 = vector.shape_cast %0 : vector<1x8x16x24xf32> to vector<8x16x24xf32>
    %2 = vector.shape_cast %1 : vector<8x16x24xf32> to vector<128x24xf32>
    %c0_3 = arith.constant 0 : index
    %c0_4 = arith.constant 0 : index
    %3 = vector.load %arg4[%c0_3, %c0_4] : memref<24x128xf32, #tpu.memory_space<vmem>>, vector<24x128xf32>
    %cst = arith.constant dense<0.000000e+00> : vector<128x128xf32>
    %4 = tpu.matmul %2, %3, %cst {dimension_numbers = #tpu.dot_dimension_numbers<[1], [0], [0], [1], [0, 0, 1, 1], [], []>} : vector<128x24xf32>, vector<24x128xf32>, vector<128x128xf32> -> vector<128x128xf32>
    %5 = vector.extract_strided_slice %2 {offsets = [0, 0], sizes = [128, 12], strides = [1, 1]} : vector<128x24xf32> to vector<128x12xf32>
    %c0_5 = arith.constant 0 : index
    %c0_6 = arith.constant 0 : index
    %6 = vector.load %arg5[%c0_5, %c0_6] : memref<12x128xf32, #tpu.memory_space<vmem>>, vector<12x128xf32>
    %cst_7 = arith.constant dense<0.000000e+00> : vector<128x128xf32>
    %7 = tpu.matmul %5, %6, %cst_7 {dimension_numbers = #tpu.dot_dimension_numbers<[1], [0], [0], [1], [0, 0, 1, 1], [], []>} : vector<128x12xf32>, vector<12x128xf32>, vector<128x128xf32> -> vector<128x128xf32>
    %8 = vector.extract_strided_slice %7 {offsets = [1, 0], sizes = [127, 128], strides = [1, 1]} : vector<128x128xf32> to vector<127x128xf32>
    %9 = vector.extract_strided_slice %7 {offsets = [0, 0], sizes = [1, 128], strides = [1, 1]} : vector<128x128xf32> to vector<1x128xf32>
    %10 = tpu.concatenate %8, %9 in 0 : vector<127x128xf32>, vector<1x128xf32> -> vector<128x128xf32>
    %11 = arith.addf %4, %10 : vector<128x128xf32>
    %c0_8 = arith.constant 0 : index
    %c0_9 = arith.constant 0 : index
    %12 = vector.load %arg6[%c0_8, %c0_9] : memref<1x128xf32, #tpu.memory_space<vmem>>, vector<1x128xf32>
    %13 = vector.broadcast %12 : vector<1x128xf32> to vector<128x128xf32>
    %14 = arith.addf %11, %13 : vector<128x128xf32>
    %c0_10 = arith.constant 0 : index
    %c0_11 = arith.constant 0 : index
    %c0_12 = arith.constant 0 : index
    %15 = vector.load %arg7[%c0_10, %c0_11, %c0_12] : memref<1x128x128xf32, #tpu.memory_space<vmem>>, vector<1x128x128xf32>
    %16 = vector.shape_cast %15 : vector<1x128x128xf32> to vector<128x128xf32>
    %17 = vector.shape_cast %14 : vector<128x128xf32> to vector<1x128x128xf32>
    tpu.vector_store %arg7[%c0_10, %c0_11, %c0_12], %17 {strides = array<i32>} : memref<1x128x128xf32, #tpu.memory_space<vmem>>, vector<1x128x128xf32>,
    return
  }
  func.func @transform_0(%arg0: i32, %arg1: i32, %arg2: i32) -> (i32, i32, i32, i32) {
    %c0_i32 = arith.constant 0 : i32
    %c0_i32_0 = arith.constant 0 : i32
    %c0_i32_1 = arith.constant 0 : i32
    return %arg1, %arg2, %c0_i32, %c0_i32_0 : i32, i32, i32, i32
  }
  func.func @transform_1(%arg0: i32, %arg1: i32, %arg2: i32) -> (i32, i32) {
    %c0_i32 = arith.constant 0 : i32
    %c0_i32_0 = arith.constant 0 : i32
    return %c0_i32, %arg0 : i32, i32
  }
  func.func @transform_2(%arg0: i32, %arg1: i32, %arg2: i32) -> (i32, i32) {
    %c0_i32 = arith.constant 0 : i32
    %c0_i32_0 = arith.constant 0 : i32
    return %c0_i32, %arg0 : i32, i32
  }
  func.func @transform_3(%arg0: i32, %arg1: i32, %arg2: i32) -> (i32, i32) {
    %c0_i32 = arith.constant 0 : i32
    %c0_i32_0 = arith.constant 0 : i32
    return %c0_i32, %arg0 : i32, i32
  }
  func.func @transform_4(%arg0: i32, %arg1: i32, %arg2: i32) -> (i32, i32, i32) {
    %c0_i32 = arith.constant 0 : i32
    return %arg1, %arg2, %arg0 : i32, i32, i32
  }
}

</mosaic_0001>

<bundles_post_ra>
// kernel: downsample_conv.1
= control target key start
LH: loop header
LB: loop body
LE: loop exit
PB: predicated region body
PF: predicated region fallthrough
CT: control target
= control target key end

     0   :  { %s1168_s15 = smov 0   ;;  %s1170_s16 = smov 0   ;;  %s1335_s0 = inlined_call_operand.vmem [shape: f32[2,8,16,24], index: 0, kind: input, shape index: {}]   ;;  %s1336_s1 = inlined_call_operand.vmem [shape: f32[24,128], index: 1, kind: input, shape index: {}]   ;;  %s1337_s2 = inlined_call_operand.vmem [shape: f32[12,128], index: 2, kind: input, shape index: {}]   ;;  %s1338_s3 = inlined_call_operand.vmem [shape: f32[1,128], index: 3, kind: input, shape index: {}]   ;;  %s1339_s4 = inlined_call_operand.vmem [shape: f32[2,128,128], index: 4, kind: output, shape index: {}]  }
   0x1   :  { %s1172_s17 = smov 0  }
   0x2 LB: > { %s29_s18 = sadd.s32 1, %s1137_s16  ;;  %p957_p0 = scmp.ge.s32.totalorder %s1141_s17, 1  ;;  %s1141_s17 = sphi %s1172_s17, %s14_s17   ;;  %s1137_s16 = sphi %s1170_s16, %s1341_s16   ;;  %s1133_s15 = sphi %s1168_s15, %s1340_s15  }
   0x3   : > { %p31_p1 = scmp.ge.s32.totalorder %s29_s18, 2  ;;  %p219_p2 = scmp.lt.s32.totalorder %s1141_s17, 3 }
   0x5   : > { %s1343_s18 = smov (%p31_p1, %s29_s18), 0  ;;  %p220_p3 = pnand %p957_p0, %p219_p2 }
   0x6   : > { %p269_p4 = scmp.lt.s32.totalorder (!%p220_p3), %s1133_s15, 1 }
   0x7   : > { %223 = sbr.rel (%p220_p3) target bundleno = 250 (0xfa), region = 36 }
   0xc   : > { %v321_v0 = vld [vmem:[%s1336_s1 + $0x10] sm:$0xff]  ;;  %v323_v1 = vld [vmem:[%s1337_s2 + $0x8] sm:$0xf]  ;;  %vm373_vm0 = vcmask 1043456   ;;  %v322_v3 = vld [vmem:[%s1337_s2] sm:$0xff]  ;;  %s1345_s15 = smov (!%p269_p4, %s1133_s15), 1 }
   0xd   : > { %v320_v2 = vld [vmem:[%s1336_s1 + $0x8] sm:$0xff]  ;;  %1065 = vmatprep.subr.mxu1 %v321_v0  ;;  %1037 = vmatprep.subr.msk.mxu0 %vm373_vm0, %v323_v1  ;;  %v319_v4 = vld [vmem:[%s1336_s1] sm:$0xff]  ;;  %s998_s29 = sshll.u32 %s1345_s15, 7  ;;  %vm324_vm1 = vcmask 97280   ;;  %vm588_vm2 = vcmask 195584   ;;  %vm538_vm3 = vcmask 1046528  }
   0xe   : > { %1066 = vmatpush3.msra.mxu1 %v321_v0  ;;  %1038 = vmatpush3.msk.msra.mxu0 %vm373_vm0, %v323_v1  ;;  %s1209_s6 = scalar_lea.vmem %s1335_s0, %s998_s29  ;;  %v1268_v30 = vld [vmem:[%s1338_s3] ss:$0 sm:$0xff]  ;;  %s1275_s11 = scalar_lea.vmem %s1339_s4, %s998_s29 }
   0xf   : > { %1067 = vmatprep.subr.mxu1 %v320_v2  ;;  %1039 = vmatprep.subr.mxu0 %v322_v3  ;;  %v303_v5 = vld [vmem:[%s1209_s6] sm:$0xff]  ;;  %v304_v6 = vld [vmem:[%s1209_s6 + $0x8] sm:$0xff]  ;;  %v305_v7 = vld [vmem:[%s1209_s6 + $0x10] sm:$0xff] }
  0x10   : > { %1068 = vmatpush3.msra.mxu1 %v320_v2  ;;  %1040 = vmatpush3.msra.mxu0 %v322_v3  ;;  %v306_v8 = vld [vmem:[%s1209_s6 + $0x18] sm:$0xff]  ;;  %v307_v9 = vld [vmem:[%s1209_s6 + $0x20] sm:$0xff]  ;;  %v308_v10 = vld [vmem:[%s1209_s6 + $0x28] sm:$0xff] }
  0x11   : > { %1069 = vmatprep.subr.mxu1 %v319_v4  ;;  %1041 = vmatprep.mubr.msk.f32.mxu0 %vm324_vm1, %v303_v5  ;;  %v309_v11 = vld [vmem:[%s1209_s6 + $0x30] sm:$0xff]  ;;  %v310_v12 = vld [vmem:[%s1209_s6 + $0x38] sm:$0xff]  ;;  %v311_v13 = vld [vmem:[%s1209_s6 + $0x40] sm:$0xff] }
  0x12   : > { %1070 = vmatpush3.msra.mxu1 %v319_v4  ;;  %1071 = vmatprep.mubr.msk.f32.mxu1 %vm588_vm2, %v303_v5  ;;  %v312_v14 = vld [vmem:[%s1209_s6 + $0x48] sm:$0xff]  ;;  %v313_v15 = vld [vmem:[%s1209_s6 + $0x50] sm:$0xff]  ;;  %v314_v16 = vld [vmem:[%s1209_s6 + $0x58] sm:$0xff] }
  0x13   : > { %1042 = vmatmul.mubr.msk.f32.vlgmr.msra.gmra.mxu0 %vm324_vm1, %v304_v6  ;;  %1072 = vmatmul.mubr.msk.f32.vlgmr.msra.gmra.mxu1 %vm588_vm2, %v304_v6  ;;  %v315_v17 = vld [vmem:[%s1209_s6 + $0x60] sm:$0xff]  ;;  %v316_v18 = vld [vmem:[%s1209_s6 + $0x68] sm:$0xff]  ;;  %v317_v19 = vld [vmem:[%s1209_s6 + $0x70] sm:$0xff] }
  0x14   : > { %1044 = vmatprep.mubr.msk.f32.mxu0 %vm324_vm1, %v305_v7  ;;  %1074 = vmatprep.mubr.msk.f32.mxu1 %vm588_vm2, %v305_v7  ;;  %v318_v20 = vld [vmem:[%s1209_s6 + $0x78] sm:$0xff] }
  0x17   : > { %1045 = vmatmul.mubr.msk.f32.gmra.mxu0 %vm324_vm1, %v306_v8  ;;  %1075 = vmatmul.mubr.msk.f32.gmra.mxu1 %vm588_vm2, %v306_v8 }
  0x18   : > { %1047 = vmatprep.mubr.msk.f32.mxu0 %vm324_vm1, %v307_v9  ;;  %1077 = vmatprep.mubr.msk.f32.mxu1 %vm588_vm2, %v307_v9 }
  0x1b   : > { %1048 = vmatmul.mubr.msk.f32.gmra.mxu0 %vm324_vm1, %v308_v10  ;;  %1078 = vmatmul.mubr.msk.f32.gmra.mxu1 %vm588_vm2, %v308_v10 }
  0x1c   : > { %1050 = vmatprep.mubr.msk.f32.mxu0 %vm324_vm1, %v309_v11  ;;  %1080 = vmatprep.mubr.msk.f32.mxu1 %vm588_vm2, %v309_v11 }
  0x1f   : > { %1051 = vmatmul.mubr.msk.f32.gmra.mxu0 %vm324_vm1, %v310_v12  ;;  %1081 = vmatmul.mubr.msk.f32.gmra.mxu1 %vm588_vm2, %v310_v12 }
  0x20   : > { %1053 = vmatprep.mubr.msk.f32.mxu0 %vm324_vm1, %v311_v13  ;;  %1083 = vmatprep.mubr.msk.f32.mxu1 %vm588_vm2, %v311_v13 }
  0x23   : > { %1054 = vmatmul.mubr.msk.f32.gmra.mxu0 %vm324_vm1, %v312_v14  ;;  %1084 = vmatmul.mubr.msk.f32.gmra.mxu1 %vm588_vm2, %v312_v14 }
  0x24   : > { %1056 = vmatprep.mubr.msk.f32.mxu0 %vm324_vm1, %v313_v15  ;;  %1086 = vmatprep.mubr.msk.f32.mxu1 %vm588_vm2, %v313_v15 }
  0x27   : > { %1057 = vmatmul.mubr.msk.f32.gmra.mxu0 %vm324_vm1, %v314_v16  ;;  %1087 = vmatmul.mubr.msk.f32.gmra.mxu1 %vm588_vm2, %v314_v16 }
  0x28   : > { %1059 = vmatprep.mubr.msk.f32.mxu0 %vm324_vm1, %v315_v17  ;;  %1089 = vmatprep.mubr.msk.f32.mxu1 %vm588_vm2, %v315_v17 }
  0x2b   : > { %1060 = vmatmul.mubr.msk.f32.gmra.mxu0 %vm324_vm1, %v316_v18  ;;  %1090 = vmatmul.mubr.msk.f32.gmra.mxu1 %vm588_vm2, %v316_v18 }
  0x2c   : > { %1062 = vmatprep.mubr.msk.f32.mxu0 %vm324_vm1, %v317_v19  ;;  %1092 = vmatprep.mubr.msk.f32.mxu1 %vm588_vm2, %v317_v19 }
  0x2f   : > { %1063 = vmatmul.mubr.msk.f32.gmra.mxu0 %vm324_vm1, %v318_v20  ;;  %1093 = vmatmul.mubr.msk.f32.gmra.mxu1 %vm588_vm2, %v318_v20 }
  0xd3   : > { %v1043_v21 = vpop.f32.mrf.mxu0  ;;  %v1073_v22 = vpop.f32.mrf.mxu1 }
  0xd4   : > { %v540_v25 = vrot.slane %v1043_v21, 1 }
  0xd5   : > { %v1259_v23 = vpop.f32.mrf.mxu0  ;;  %v687_v24 = vpop.f32.mrf.mxu1 }
  0xd6   : > { %v539_v26 = vrot.slane %v1259_v23, 1 }
  0xd7   : > { %v1046_v27 = vpop.f32.mrf.mxu0  ;;  %v1076_v28 = vpop.f32.mrf.mxu1 }
  0xd8   : > { %v541_v29 = vsel %vm538_vm3, %v539_v26, %v540_v25  ;;  %v544_v34 = vrot.slane %v1046_v27, 1 }
  0xd9   : > { %v688_v31 = vadd.f32 %v687_v24, %v541_v29  ;;  %v453_v32 = vpop.f32.mrf.mxu0  ;;  %v697_v33 = vpop.f32.mrf.mxu1 }
  0xda   : > { %v542_v35 = vrot.slane %v453_v32, 1 }
  0xdb   : > { %v773_v36 = vadd.f32 %v1268_v30, %v688_v31  ;;  %v1049_v37 = vpop.f32.mrf.mxu0  ;;  %v1079_v38 = vpop.f32.mrf.mxu1 }
  0xdc   : > { %v543_v39 = vsel %vm538_vm3, %v540_v25, %v542_v35  ;;  %v545_v40 = vsel %vm538_vm3, %v542_v35, %v544_v34  ;;  %v548_v45 = vrot.slane %v1049_v37, 1 }
  0xdd   : > { %789 = vst [vmem:[%s1275_s11] sm:$0xff] %v773_v36  ;;  %v693_v41 = vadd.f32 %v1073_v22, %v543_v39  ;;  %v698_v42 = vadd.f32 %v697_v33, %v545_v40  ;;  %v463_v43 = vpop.f32.mrf.mxu0  ;;  %v707_v44 = vpop.f32.mrf.mxu1 }
  0xde   : > { %v546_v46 = vrot.slane %v463_v43, 1 }
  0xdf   : > { %v774_v47 = vadd.f32 %v1268_v30, %v693_v41  ;;  %v775_v48 = vadd.f32 %v1268_v30, %v698_v42  ;;  %v1052_v49 = vpop.f32.mrf.mxu0  ;;  %v1082_v50 = vpop.f32.mrf.mxu1 }
  0xe0   : > { %v547_v51 = vsel %vm538_vm3, %v544_v34, %v546_v46  ;;  %v549_v52 = vsel %vm538_vm3, %v546_v46, %v548_v45  ;;  %v552_v57 = vrot.slane %v1052_v49, 1 }
  0xe1   : > { %790 = vst [vmem:[%s1275_s11 + $0x8] sm:$0xff] %v774_v47  ;;  %791 = vst [vmem:[%s1275_s11 + $0x10] sm:$0xff] %v775_v48  ;;  %v703_v53 = vadd.f32 %v1076_v28, %v547_v51  ;;  %v708_v54 = vadd.f32 %v707_v44, %v549_v52  ;;  %v473_v55 = vpop.f32.mrf.mxu0  ;;  %v717_v56 = vpop.f32.mrf.mxu1 }
  0xe2   : > { %v550_v58 = vrot.slane %v473_v55, 1 }
  0xe3   : > { %v776_v59 = vadd.f32 %v1268_v30, %v703_v53  ;;  %v777_v60 = vadd.f32 %v1268_v30, %v708_v54  ;;  %v1055_v61 = vpop.f32.mrf.mxu0  ;;  %v1085_v62 = vpop.f32.mrf.mxu1 }
  0xe4   : > { %v551_v63 = vsel %vm538_vm3, %v548_v45, %v550_v58  ;;  %v553_v0 = vsel %vm538_vm3, %v550_v58, %v552_v57  ;;  %v556_v5 = vrot.slane %v1055_v61, 1 }
  0xe5   : > { %792 = vst [vmem:[%s1275_s11 + $0x18] sm:$0xff] %v776_v59  ;;  %793 = vst [vmem:[%s1275_s11 + $0x20] sm:$0xff] %v777_v60  ;;  %v713_v1 = vadd.f32 %v1079_v38, %v551_v63  ;;  %v718_v2 = vadd.f32 %v717_v56, %v553_v0  ;;  %v483_v3 = vpop.f32.mrf.mxu0  ;;  %v727_v4 = vpop.f32.mrf.mxu1 }
  0xe6   : > { %v554_v6 = vrot.slane %v483_v3, 1 }
  0xe7   : > { %v778_v7 = vadd.f32 %v1268_v30, %v713_v1  ;;  %v779_v8 = vadd.f32 %v1268_v30, %v718_v2  ;;  %v1058_v9 = vpop.f32.mrf.mxu0  ;;  %v1088_v10 = vpop.f32.mrf.mxu1 }
  0xe8   : > { %v555_v11 = vsel %vm538_vm3, %v552_v57, %v554_v6  ;;  %v557_v12 = vsel %vm538_vm3, %v554_v6, %v556_v5  ;;  %v560_v17 = vrot.slane %v1058_v9, 1 }
  0xe9   : > { %794 = vst [vmem:[%s1275_s11 + $0x28] sm:$0xff] %v778_v7  ;;  %795 = vst [vmem:[%s1275_s11 + $0x30] sm:$0xff] %v779_v8  ;;  %v723_v13 = vadd.f32 %v1082_v50, %v555_v11  ;;  %v728_v14 = vadd.f32 %v727_v4, %v557_v12  ;;  %v493_v15 = vpop.f32.mrf.mxu0  ;;  %v737_v16 = vpop.f32.mrf.mxu1 }
  0xea   : > { %v558_v18 = vrot.slane %v493_v15, 1 }
  0xeb   : > { %v780_v19 = vadd.f32 %v1268_v30, %v723_v13  ;;  %v781_v20 = vadd.f32 %v1268_v30, %v728_v14  ;;  %v1061_v21 = vpop.f32.mrf.mxu0  ;;  %v1091_v22 = vpop.f32.mrf.mxu1 }
  0xec   : > { %v559_v24 = vsel %vm538_vm3, %v556_v5, %v558_v18  ;;  %v561_v25 = vsel %vm538_vm3, %v558_v18, %v560_v17  ;;  %v564_v32 = vrot.slane %v1061_v21, 1 }
  0xed   : > { %796 = vst [vmem:[%s1275_s11 + $0x38] sm:$0xff] %v780_v19  ;;  %797 = vst [vmem:[%s1275_s11 + $0x40] sm:$0xff] %v781_v20  ;;  %v733_v27 = vadd.f32 %v1085_v62, %v559_v24  ;;  %v738_v28 = vadd.f32 %v737_v16, %v561_v25  ;;  %v503_v29 = vpop.f32.mrf.mxu0  ;;  %v747_v31 = vpop.f32.mrf.mxu1 }
  0xee   : > { %v562_v33 = vrot.slane %v503_v29, 1 }
  0xef   : > { %v782_v34 = vadd.f32 %v1268_v30, %v733_v27  ;;  %v783_v35 = vadd.f32 %v1268_v30, %v738_v28  ;;  %v1064_v36 = vpop.f32.mrf.mxu0  ;;  %v1094_v40 = vpop.f32.mrf.mxu1 }
  0xf0   : > { %v563_v37 = vsel %vm538_vm3, %v560_v17, %v562_v33  ;;  %v565_v38 = vsel %vm538_vm3, %v562_v33, %v564_v32  ;;  %v568_v39 = vrot.slane %v1064_v36, 1 }
  0xf1   : > { %798 = vst [vmem:[%s1275_s11 + $0x48] sm:$0xff] %v782_v34  ;;  %799 = vst [vmem:[%s1275_s11 + $0x50] sm:$0xff] %v783_v35  ;;  %v743_v41 = vadd.f32 %v1088_v10, %v563_v37  ;;  %v748_v42 = vadd.f32 %v747_v31, %v565_v38  ;;  %v513_v43 = vpop.f32.mrf.mxu0  ;;  %v757_v51 = vpop.f32.mrf.mxu1 }
  0xf2   : > { %v587_v44 = vsel %vm538_vm3, %v568_v39, %v539_v26  ;;  %v566_v45 = vrot.slane %v513_v43, 1 }
  0xf3   : > { %v784_v46 = vadd.f32 %v1268_v30, %v743_v41  ;;  %v785_v47 = vadd.f32 %v1268_v30, %v748_v42  ;;  %v763_v48 = vadd.f32 %v1094_v40, %v587_v44 }
  0xf4   : > { %v567_v49 = vsel %vm538_vm3, %v564_v32, %v566_v45  ;;  %v569_v50 = vsel %vm538_vm3, %v566_v45, %v568_v39 }
  0xf5   : > { %800 = vst [vmem:[%s1275_s11 + $0x58] sm:$0xff] %v784_v46  ;;  %801 = vst [vmem:[%s1275_s11 + $0x60] sm:$0xff] %v785_v47  ;;  %v788_v52 = vadd.f32 %v1268_v30, %v763_v48  ;;  %v753_v23 = vadd.f32 %v1091_v22, %v567_v49  ;;  %v758_v53 = vadd.f32 %v757_v51, %v569_v50 }
  0xf7   : > { %804 = vst [vmem:[%s1275_s11 + $0x78] sm:$0xff] %v788_v52  ;;  %v786_v26 = vadd.f32 %v1268_v30, %v753_v23  ;;  %v787_v54 = vadd.f32 %v1268_v30, %v758_v53 }
  0xf9   : > { %802 = vst [vmem:[%s1275_s11 + $0x68] sm:$0xff] %v786_v26  ;;  %803 = vst [vmem:[%s1275_s11 + $0x70] sm:$0xff] %v787_v54 }
  0xfa PF: > { %s14_s17 = sadd.s32 1, %s1141_s17   ;;  %s1340_s15 = smov %s1137_s16 }
  0xfb   : > { %p11_p5 = scmp.ge.s32.totalorder %s14_s17, 4   ;;  %s1341_s16 = smov %s1343_s18 }
  0xfd   :  { %13 = sbr.rel (!%p11_p5) target bundleno = 2 (0x2), region = 75 }

</bundles_post_ra>
